<compile_context>
chip_gen: v5e
topology: v5e:2x2
jax: 0.10.0
libtpu: 0.0.40
codegen_flags: <defaults>
</compile_context>

<pallas_src>
import functools

import jax
import jax.numpy as jnp
from jax.experimental import pallas as pl
from jax.experimental.pallas import tpu as pltpu


def _res_cheb_gc_diff_kernel(
    g1_ref,     # (M, 3*Cin)      bf16  hoisted layer-1 Chebyshev features [x | T1 x | T2 x]
    tcat_ref,   # (2*M, M)        bf16  [block_diag(T1); block_diag(T2)] for the batch block
    w1_ref,     # (3*Cin, H)      bf16  fused Chebyshev weights, layer 1
    b1_ref,     # (1, H)          f32
    w2_ref,     # (3*H, Cout)     bf16  fused Chebyshev weights, layer 2
    b2_ref,     # (1, Cout)       f32
    tproj_ref,  # (block_b, 1, H) f32   precomputed temb projection (per batch element)
    out_ref,    # (M, Cout)
    *, block_b, n_joints, cin, hid,
):
    M = block_b * n_joints
    g1 = g1_ref[...]                                                    # (M, 3*Cin) bf16

    # --- gconv1: fused 3-term Chebyshev matmul + bias + ReLU (dropout = identity) ---
    h = jnp.dot(g1, w1_ref[...], preferred_element_type=jnp.float32)    # (M, H)
    h = jnp.maximum(h + b1_ref[...], 0.0)

    # --- + temb_proj(nonlinearity(temb)), broadcast over joints (no repeated stream) ---
    h = (h.reshape(block_b, n_joints, hid) + tproj_ref[...]).reshape(M, hid)

    # --- gconv2: single fused block-diagonal dot yields T1·h and T2·h at once ---
    h_bf = h.astype(jnp.bfloat16)
    th = jnp.dot(tcat_ref[...], h_bf, preferred_element_type=jnp.float32)   # (2M, H)
    g2 = jnp.concatenate(
        [h_bf, th[:M].astype(jnp.bfloat16), th[M:].astype(jnp.bfloat16)], axis=-1)
    h2 = jnp.dot(g2, w2_ref[...], preferred_element_type=jnp.float32)   # (M, Cout)
    h2 = jnp.maximum(h2 + b2_ref[...], 0.0)

    # --- residual add: T0 channel of g1 is x (bf16 source) ---
    out_ref[...] = (g1[:, :cin].astype(jnp.float32) + h2).astype(out_ref.dtype)


def res_cheb_gc_diff(x, adj, temb, params, *, block_b=16):
    B, N, Cin = x.shape
    w1, b1 = params["w1"], params["b1"]
    w2, b2 = params["w2"], params["b2"]
    wt, bt = params["wt"], params["bt"]
    H = w1.shape[-1]
    Cout = w2.shape[-1]
    assert Cin == Cout, "residual add requires input_dim == output_dim"

    f32, bf16 = jnp.float32, jnp.bfloat16

    # ---------- batch blocking: M = block_b * N rows per grid step ----------
    block_b = max(1, min(block_b, B))
    n_blocks = -(-B // block_b)                       # cdiv
    # Prefer >=2 grid steps (keeps the second v7x TensorCore busy) as long as each
    # block keeps >=128 rows feeding the MXU.
    if n_blocks == 1 and B >= 2 and (-(-B // 2)) * N >= 128:
        block_b = -(-B // 2)
        n_blocks = -(-B // block_b)
    B_pad = n_blocks * block_b
    M = block_b * N
    assert (M % 8 == 0) or (n_blocks == 1), "block_b*N must be sublane-aligned"

    # ---------- batch-invariant precompute (once per call, plain XLA) ----------
    adj_f = adj.astype(f32)
    eye = jnp.eye(N, dtype=f32)
    d_inv_sqrt = jax.lax.rsqrt(jnp.sum(adj_f, axis=-1))   # adj rows must be positive
    lap = eye - (d_inv_sqrt[:, None] * adj_f) * d_inv_sqrt[None, :]
    t1 = lap
    t2 = 2.0 * (lap @ lap) - eye

    # Layer-1 Chebyshev features hoisted to XLA: [x | T1 x | T2 x]  (B, N, 3*Cin).
    x_f = x.astype(f32)
    t1x = jnp.einsum("nm,bmc->bnc", t1, x_f)
    t2x = jnp.einsum("nm,bmc->bnc", t2, x_f)
    g1 = jnp.concatenate([x_f, t1x, t2x], axis=-1).astype(bf16)

    # Fused block-diagonal T for layer 2: [block_diag(T1); block_diag(T2)]  (2M, M).
    eye_b = jnp.eye(block_b, dtype=f32)
    tcat_bd = jnp.concatenate(
        [jnp.kron(eye_b, t1), jnp.kron(eye_b, t2)], axis=0).astype(bf16)

    # Fused Chebyshev weights: y = [h | T1 h | T2 h] @ vstack(W0, W1, W2) + b.
    w1f = w1.reshape(3 * Cin, H).astype(bf16)
    w2f = w2.reshape(3 * H, Cout).astype(bf16)
    b1f = b1.reshape(1, H).astype(f32)
    b2f = b2.reshape(1, Cout).astype(f32)

    # temb swish + Linear hoisted to XLA; NOT repeated over joints.
    t = temb.astype(f32)
    tproj = (t * jax.nn.sigmoid(t)) @ wt.astype(f32) + bt.reshape(1, H).astype(f32)

    if B_pad != B:
        g1 = jnp.concatenate(
            [g1, jnp.zeros((B_pad - B, N, 3 * Cin), bf16)], axis=0)
        tproj = jnp.concatenate(
            [tproj, jnp.zeros((B_pad - B, H), f32)], axis=0)
    g1_2d = g1.reshape(B_pad * N, 3 * Cin)
    tproj3 = tproj.reshape(B_pad, 1, H)

    kernel = functools.partial(
        _res_cheb_gc_diff_kernel,
        block_b=block_b, n_joints=N, cin=Cin, hid=H)

    # Advisory cost estimate so XLA can overlap the wrapper precompute with the kernel.
    flops = n_blocks * 2 * (M * 3 * Cin * H + 2 * M * M * H + M * 3 * H * Cout)
    bytes_accessed = (
        B_pad * N * 3 * Cin * 2          # g1 slab (bf16)
        + 2 * M * M * 2                  # Tcat (bf16, resident)
        + (3 * Cin * H + 3 * H * Cout) * 2
        + (H + Cout) * 4
        + B_pad * H * 4                  # tproj
        + B_pad * N * Cout * x.dtype.itemsize)
    cost = pl.CostEstimate(
        flops=int(flops), transcendentals=0, bytes_accessed=int(bytes_accessed))

    out2d = pl.pallas_call(
        kernel,
        out_shape=jax.ShapeDtypeStruct((B_pad * N, Cout), x.dtype),
        grid_spec=pltpu.PrefetchScalarGridSpec(
            num_scalar_prefetch=0,
            grid=(n_blocks,),
            in_specs=[
                pl.BlockSpec((M, 3 * Cin), lambda i: (i, 0)),        # g1 slab
                pl.BlockSpec((2 * M, M), lambda i: (0, 0)),          # Tcat block-diag
                pl.BlockSpec((3 * Cin, H), lambda i: (0, 0)),        # W1 fused
                pl.BlockSpec((1, H), lambda i: (0, 0)),              # b1
                pl.BlockSpec((3 * H, Cout), lambda i: (0, 0)),       # W2 fused
                pl.BlockSpec((1, Cout), lambda i: (0, 0)),           # b2
                pl.BlockSpec((block_b, 1, H), lambda i: (i, 0, 0)),  # temb projection
            ],
            out_specs=pl.BlockSpec((M, Cout), lambda i: (i, 0)),
        ),
        compiler_params=pltpu.CompilerParams(
            dimension_semantics=("parallel",)),
        cost_estimate=cost,
    )(g1_2d, tcat_bd, w1f, b1f, w2f, b2f, tproj3)

    return out2d.reshape(B_pad, N, Cout)[:B]


def _reference(x, adj, temb, p):
    """Pure-JAX f32 reference of the PyTorch forward (inference mode)."""
    n = adj.shape[0]
    eye = jnp.eye(n, dtype=jnp.float32)
    d_inv_sqrt = jax.lax.rsqrt(jnp.sum(adj, axis=-1))
    lap = eye - (d_inv_sqrt[:, None] * adj) * d_inv_sqrt[None, :]
    T = jnp.stack([eye, lap, 2.0 * lap @ lap - eye])              # [3, N, N]

    def cheb(h, w, b):
        return jnp.einsum("knm,bmc,kcd->bnd", T, h, w) + b        # b: [1, D]

    h = jax.nn.relu(cheb(x, p["w1"], p["b1"]))
    t = temb * jax.nn.sigmoid(temb)
    h = h + (t @ p["wt"] + p["bt"])[:, None, :]
    h2 = jax.nn.relu(cheb(h, p["w2"], p["b2"]))
    return x + h2


if __name__ == "__main__":
    # Shapes consistent with the module: joints N=16, input_dim = output_dim = 32,
    # hid_dim = 64, emd_dim = 48.
    N, Cin, H, E = 16, 32, 64, 48
    Cout = Cin

    key = jax.random.PRNGKey(0)
    ks = jax.random.split(key, 9)

    a = jax.random.uniform(ks[2], (N, N), dtype=jnp.float32)
    adj = 0.5 * (a + a.T) + jnp.eye(N, dtype=jnp.float32)  # symmetric, positive degrees

    params = {
        "w1": 0.1 * jax.random.normal(ks[3], (3, Cin, H), dtype=jnp.float32),
        "b1": 0.1 * jax.random.normal(ks[4], (1, H), dtype=jnp.float32),
        "w2": 0.1 * jax.random.normal(ks[5], (3, H, Cout), dtype=jnp.float32),
        "b2": 0.1 * jax.random.normal(ks[6], (1, Cout), dtype=jnp.float32),
        "wt": 0.1 * jax.random.normal(ks[7], (E, H), dtype=jnp.float32),
        "bt": 0.1 * jax.random.normal(ks[8], (1, H), dtype=jnp.float32),
    }

    def run_case(B):
        x = jax.random.normal(ks[0], (B, N, Cin), dtype=jnp.float32)
        temb = jax.random.normal(ks[1], (B, E), dtype=jnp.float32)
        out = jax.block_until_ready(res_cheb_gc_diff(x, adj, temb, params))
        ref = jax.block_until_ready(_reference(x, adj, temb, params))
        assert out.shape == (B, N, Cout)
        # bf16 MXU operands / bf16 residual source with f32 accumulation -> loose tol.
        assert jnp.allclose(out, ref, atol=5e-2, rtol=5e-2), f"mismatch (B={B})"

    # Case 1: small batch (B=2) — single grid step, block_b clamped to B.
    run_case(2)
    # Case 2: medium batch (B=12) — single block of M=192 rows, no padding.
    run_case(12)
    # Case 3: B=20 — multi-step "parallel" grid (block_b=16, M=256 rows, fills the
    #         256x256 MXU and both v7x TensorCores) plus batch padding to B_pad=32.
    run_case(20)

    print("KERNEL_OK")
</pallas_src>

<mosaic_0001>
module attributes {stable_mosaic.version = 11 : i64} {
  func.func @_res_cheb_gc_diff_kernel(%arg0: i32, %arg1: memref<32x96xbf16, #tpu.memory_space<vmem>>, %arg2: memref<64x32xbf16, #tpu.memory_space<vmem>>, %arg3: memref<96x64xbf16, #tpu.memory_space<vmem>>, %arg4: memref<1x64xf32, #tpu.memory_space<vmem>>, %arg5: memref<192x32xbf16, #tpu.memory_space<vmem>>, %arg6: memref<1x32xf32, #tpu.memory_space<vmem>>, %arg7: memref<2x1x64xf32, #tpu.memory_space<vmem>>, %arg8: memref<32x32xf32, #tpu.memory_space<vmem>>) attributes {dimension_semantics = [#tpu.dimension_semantics<parallel>], iteration_bounds = array<i64: 1>, scalar_prefetch = 0 : i64, scratch_operands = 0 : i64, tpu.core_type = #tpu.core_type<tc>, window_params = [{transform_indices = @transform_0, window_bounds = array<i64: 32, 96>}, {pipeline_mode = #tpu.pipeline_mode<synchronous>, transform_indices = @transform_1, window_bounds = array<i64: 64, 32>}, {pipeline_mode = #tpu.pipeline_mode<synchronous>, transform_indices = @transform_2, window_bounds = array<i64: 96, 64>}, {pipeline_mode = #tpu.pipeline_mode<synchronous>, transform_indices = @transform_3, window_bounds = array<i64: 1, 64>}, {pipeline_mode = #tpu.pipeline_mode<synchronous>, transform_indices = @transform_4, window_bounds = array<i64: 192, 32>}, {pipeline_mode = #tpu.pipeline_mode<synchronous>, transform_indices = @transform_5, window_bounds = array<i64: 1, 32>}, {transform_indices = @transform_6, window_bounds = array<i64: 2, 1, 64>}, {transform_indices = @transform_7, window_bounds = array<i64: 32, 32>}]} {
    %c0 = arith.constant 0 : index
    %c0_0 = arith.constant 0 : index
    %0 = vector.load %arg1[%c0, %c0_0] : memref<32x96xbf16, #tpu.memory_space<vmem>>, vector<32x96xbf16>
    %c0_1 = arith.constant 0 : index
    %c0_2 = arith.constant 0 : index
    %1 = vector.load %arg3[%c0_1, %c0_2] : memref<96x64xbf16, #tpu.memory_space<vmem>>, vector<96x64xbf16>
    %cst = arith.constant dense<0.000000e+00> : vector<32x64xf32>
    %2 = tpu.matmul %0, %1, %cst {dimension_numbers = #tpu.dot_dimension_numbers<[1], [0], [0], [1], [0, 0, 1, 1], [], []>} : vector<32x96xbf16>, vector<96x64xbf16>, vector<32x64xf32> -> vector<32x64xf32>
    %c0_3 = arith.constant 0 : index
    %c0_4 = arith.constant 0 : index
    %3 = vector.load %arg4[%c0_3, %c0_4] : memref<1x64xf32, #tpu.memory_space<vmem>>, vector<1x64xf32>
    %4 = vector.broadcast %3 : vector<1x64xf32> to vector<32x64xf32>
    %5 = arith.addf %2, %4 : vector<32x64xf32>
    %cst_5 = arith.constant 0.000000e+00 : f32
    %6 = vector.broadcast %cst_5 : f32 to vector<32x64xf32>
    %7 = arith.maximumf %5, %6 : vector<32x64xf32>
    %8 = vector.shape_cast %7 : vector<32x64xf32> to vector<2x16x64xf32>
    %c0_6 = arith.constant 0 : index
    %c0_7 = arith.constant 0 : index
    %c0_8 = arith.constant 0 : index
    %9 = vector.load %arg7[%c0_6, %c0_7, %c0_8] : memref<2x1x64xf32, #tpu.memory_space<vmem>>, vector<2x1x64xf32>
    %10 = vector.broadcast %9 : vector<2x1x64xf32> to vector<2x16x64xf32>
    %11 = arith.addf %8, %10 : vector<2x16x64xf32>
    %12 = vector.shape_cast %11 : vector<2x16x64xf32> to vector<32x64xf32>
    %13 = arith.truncf %12 : vector<32x64xf32> to vector<32x64xbf16>
    %c0_9 = arith.constant 0 : index
    %c0_10 = arith.constant 0 : index
    %14 = vector.load %arg2[%c0_9, %c0_10] : memref<64x32xbf16, #tpu.memory_space<vmem>>, vector<64x32xbf16>
    %cst_11 = arith.constant dense<0.000000e+00> : vector<64x64xf32>
    %15 = tpu.matmul %14, %13, %cst_11 {dimension_numbers = #tpu.dot_dimension_numbers<[1], [0], [0], [1], [0, 0, 1, 1], [], []>} : vector<64x32xbf16>, vector<32x64xbf16>, vector<64x64xf32> -> vector<64x64xf32>
    %16 = vector.extract_strided_slice %15 {offsets = [0, 0], sizes = [32, 64], strides = [1, 1]} : vector<64x64xf32> to vector<32x64xf32>
    %17 = arith.truncf %16 : vector<32x64xf32> to vector<32x64xbf16>
    %18 = vector.extract_strided_slice %15 {offsets = [32, 0], sizes = [32, 64], strides = [1, 1]} : vector<64x64xf32> to vector<32x64xf32>
    %19 = arith.truncf %18 : vector<32x64xf32> to vector<32x64xbf16>
    %20 = tpu.concatenate %13, %17, %19 in 1 : vector<32x64xbf16>, vector<32x64xbf16>, vector<32x64xbf16> -> vector<32x192xbf16>
    %c0_12 = arith.constant 0 : index
    %c0_13 = arith.constant 0 : index
    %21 = vector.load %arg5[%c0_12, %c0_13] : memref<192x32xbf16, #tpu.memory_space<vmem>>, vector<192x32xbf16>
    %cst_14 = arith.constant dense<0.000000e+00> : vector<32x32xf32>
    %22 = tpu.matmul %20, %21, %cst_14 {dimension_numbers = #tpu.dot_dimension_numbers<[1], [0], [0], [1], [0, 0, 1, 1], [], []>} : vector<32x192xbf16>, vector<192x32xbf16>, vector<32x32xf32> -> vector<32x32xf32>
    %c0_15 = arith.constant 0 : index
    %c0_16 = arith.constant 0 : index
    %23 = vector.load %arg6[%c0_15, %c0_16] : memref<1x32xf32, #tpu.memory_space<vmem>>, vector<1x32xf32>
    %24 = vector.broadcast %23 : vector<1x32xf32> to vector<32x32xf32>
    %25 = arith.addf %22, %24 : vector<32x32xf32>
    %cst_17 = arith.constant 0.000000e+00 : f32
    %26 = vector.broadcast %cst_17 : f32 to vector<32x32xf32>
    %27 = arith.maximumf %25, %26 : vector<32x32xf32>
    %28 = vector.extract_strided_slice %0 {offsets = [0, 0], sizes = [32, 32], strides = [1, 1]} : vector<32x96xbf16> to vector<32x32xbf16>
    %29 = arith.extf %28 : vector<32x32xbf16> to vector<32x32xf32>
    %30 = arith.addf %29, %27 : vector<32x32xf32>
    %c0_18 = arith.constant 0 : index
    %c0_19 = arith.constant 0 : index
    %31 = vector.load %arg8[%c0_18, %c0_19] : memref<32x32xf32, #tpu.memory_space<vmem>>, vector<32x32xf32>
    tpu.vector_store %arg8[%c0_18, %c0_19], %30 {strides = array<i32>} : memref<32x32xf32, #tpu.memory_space<vmem>>, vector<32x32xf32>,
    return
  }
  func.func @transform_0(%arg0: i32) -> (i32, i32) {
    %c0_i32 = arith.constant 0 : i32
    %c0_i32_0 = arith.constant 0 : i32
    return %arg0, %c0_i32 : i32, i32
  }
  func.func @transform_1(%arg0: i32) -> (i32, i32) {
    %c0_i32 = arith.constant 0 : i32
    %c0_i32_0 = arith.constant 0 : i32
    %c0_i32_1 = arith.constant 0 : i32
    return %c0_i32, %c0_i32_0 : i32, i32
  }
  func.func @transform_2(%arg0: i32) -> (i32, i32) {
    %c0_i32 = arith.constant 0 : i32
    %c0_i32_0 = arith.constant 0 : i32
    %c0_i32_1 = arith.constant 0 : i32
    return %c0_i32, %c0_i32_0 : i32, i32
  }
  func.func @transform_3(%arg0: i32) -> (i32, i32) {
    %c0_i32 = arith.constant 0 : i32
    %c0_i32_0 = arith.constant 0 : i32
    %c0_i32_1 = arith.constant 0 : i32
    return %c0_i32, %c0_i32_0 : i32, i32
  }
  func.func @transform_4(%arg0: i32) -> (i32, i32) {
    %c0_i32 = arith.constant 0 : i32
    %c0_i32_0 = arith.constant 0 : i32
    %c0_i32_1 = arith.constant 0 : i32
    return %c0_i32, %c0_i32_0 : i32, i32
  }
  func.func @transform_5(%arg0: i32) -> (i32, i32) {
    %c0_i32 = arith.constant 0 : i32
    %c0_i32_0 = arith.constant 0 : i32
    %c0_i32_1 = arith.constant 0 : i32
    return %c0_i32, %c0_i32_0 : i32, i32
  }
  func.func @transform_6(%arg0: i32) -> (i32, i32, i32) {
    %c0_i32 = arith.constant 0 : i32
    %c0_i32_0 = arith.constant 0 : i32
    %c0_i32_1 = arith.constant 0 : i32
    return %arg0, %c0_i32, %c0_i32_0 : i32, i32, i32
  }
  func.func @transform_7(%arg0: i32) -> (i32, i32) {
    %c0_i32 = arith.constant 0 : i32
    %c0_i32_0 = arith.constant 0 : i32
    return %arg0, %c0_i32 : i32, i32
  }
}

</mosaic_0001>

<bundles_post_ra>
// kernel: tpu_custom_call.1
= control target key start
LH: loop header
LB: loop body
LE: loop exit
PB: predicated region body
PF: predicated region fallthrough
CT: control target
= control target key end

     0   :  { %s756_s0 = inlined_call_operand.vmem [shape: bf16[32,96], index: 0, kind: input, shape index: {}]   ;;  %s757_s1 = inlined_call_operand.vmem [shape: bf16[64,32], index: 1, kind: input, shape index: {}]   ;;  %s758_s2 = inlined_call_operand.vmem [shape: bf16[96,64], index: 2, kind: input, shape index: {}]   ;;  %s759_s3 = inlined_call_operand.vmem [shape: f32[1,64], index: 3, kind: input, shape index: {}]   ;;  %s760_s4 = inlined_call_operand.vmem [shape: bf16[192,32], index: 4, kind: input, shape index: {}]   ;;  %s761_s5 = inlined_call_operand.vmem [shape: f32[1,32], index: 5, kind: input, shape index: {}]   ;;  %s762_s6 = inlined_call_operand.vmem [shape: f32[2,1,64], index: 6, kind: input, shape index: {}]   ;;  %s763_s7 = inlined_call_operand.hbm [shape: f32[32,32], index: 7, kind: output, shape index: {}]  }
   0x1   :  { %v552_v0 = vld [vmem:[%s758_s2 + $0x28] sm:$0xff]  ;;  %v551_v1 = vld [vmem:[%s758_s2 + $0x20] sm:$0xff] }
   0x2   :  { %103 = vmatpush.bf16.msra.mxu0 %v552_v0 }
   0x3   :  { %12 = vsyncpa [#allocation3], 0  ;;  %v550_v2 = vld [vmem:[%s758_s2 + $0x18] sm:$0xff]  ;;  %v549_v3 = vld [vmem:[%s758_s2 + $0x10] sm:$0xff]  ;;  %vm94_vm0 = vcmask 785408   ;;  %vm180_vm1 = vcmask 261120  }
   0x4   :  { %v548_v4 = vld [vmem:[%s758_s2 + $0x8] sm:$0xff]  ;;  %v547_v5 = vld [vmem:[%s758_s2] sm:$0xff]  ;;  %v555_v39 = vld [vmem:[%s757_s1 + $0x10] sm:$0xff]  ;;  %s603_s18 = smov 64   ;;  %vm254_vm2 = vcmask 523264   ;;  %s604_s30 = smov [#allocation2]  }
   0x5   :  { %v545_v6 = vld [vmem:[%s756_s0] sm:$0xff]  ;;  %v546_v7 = vld [vmem:[%s756_s0 + $0x8] sm:$0xff]  ;;  %v556_v40 = vld [vmem:[%s757_s1 + $0x18] sm:$0xff]  ;;  %s427_s8 = sshll.u32 %s604_s30, 4  ;;  %s605_s11 = smov 128   ;;  %s428_s8 = int_to_ptr.vmem [resolvable:$true] %s427_s8 }
   0x6   :  { %104 = vmatpush.bf16.msra.mxu0 %v551_v1  ;;  %v573_v10 = vld [vmem:[%s759_s3] ss:$0 sm:$0xff]  ;;  %v575_v16 = vld [vmem:[%s762_s6 + $0x1] ss:$0 sm:$0xff]  ;;  %v554_v38 = vld [vmem:[%s757_s1 + $0x8] sm:$0xff] }
   0x7   :  { %v574_v20 = vld [vmem:[%s762_s6] ss:$0 sm:$0xff]  ;;  %v564_v41 = vld [vmem:[%s760_s4 + $0x38] sm:$0xff]  ;;  %v563_v44 = vld [vmem:[%s760_s4 + $0x30] sm:$0xff] }
   0x8   :  { %v553_v37 = vld [vmem:[%s757_s1] sm:$0xff]  ;;  %369 = vmatpush.bf16.msra.mxu2 %v564_v41  ;;  %v568_v43 = vld [vmem:[%s760_s4 + $0x58] sm:$0xff]  ;;  %v567_v45 = vld [vmem:[%s760_s4 + $0x50] sm:$0xff]  ;;  %s606_s1 = smov 8  }
   0x9   :  { %392 = vmatpush.bf16.msra.mxu3 %v568_v43  ;;  %v562_v46 = vld [vmem:[%s760_s4 + $0x28] sm:$0xff]  ;;  %v561_v54 = vld [vmem:[%s760_s4 + $0x20] sm:$0xff]  ;;  %v560_v57 = vld [vmem:[%s760_s4 + $0x18] sm:$0xff] }
   0xa   :  { %105 = vmatpush.bf16.msra.mxu0 %v550_v2  ;;  %v566_v53 = vld [vmem:[%s760_s4 + $0x48] sm:$0xff]  ;;  %v565_v55 = vld [vmem:[%s760_s4 + $0x40] sm:$0xff]  ;;  %v559_v58 = vld [vmem:[%s760_s4 + $0x10] sm:$0xff] }
   0xb   :  { %v558_v61 = vld [vmem:[%s760_s4 + $0x8] sm:$0xff]  ;;  %v557_v2 = vld [vmem:[%s760_s4] sm:$0xff] }
   0xc   :  { %370 = vmatpush.bf16.msra.mxu2 %v563_v44 }
   0xd   :  { %393 = vmatpush.bf16.msra.mxu3 %v567_v45 }
   0xe   :  { %106 = vmatpush.bf16.msra.mxu0 %v549_v3 }
  0x10   :  { %371 = vmatpush.bf16.msra.mxu2 %v562_v46 }
  0x11   :  { %394 = vmatpush.bf16.msra.mxu3 %v566_v53 }
  0x12   :  { %107 = vmatpush.bf16.msra.mxu0 %v548_v4 }
  0x14   :  { %372 = vmatpush.bf16.msra.mxu2 %v561_v54 }
  0x15   :  { %395 = vmatpush.bf16.msra.mxu3 %v565_v55 }
  0x16   :  { %108 = vmatpush.bf16.msra.mxu0 %v547_v5 }
  0x18   :  { %373 = vmatpush.bf16.msra.mxu2 %v560_v57 }
  0x19   :  { %473 = vmatmul.msk.bf16.vlgmr.msra.gmra.mxu0 %vm94_vm0, %v545_v6 }
  0x1c   :  { %374 = vmatpush.bf16.msra.mxu2 %v559_v58 }
  0x20   :  { %375 = vmatpush.bf16.msra.mxu2 %v558_v61 }
  0x24   :  { %376 = vmatpush.bf16.msra.mxu2 %v557_v2 }
  0x29   :  { %474 = vmatmul.msk.bf16.gmra.mxu0 %vm94_vm0, %v546_v7 }
  0x96   :  { %v110_v8 = vpop.f32.mrf.mxu0 }
  0x97   :  { %v111_v14 = vadd.f32 %v573_v10, %v110_v8 }
  0x99   :  { %v120_v19 = vmax.f32 %v111_v14, 0.0 }
  0x9b   :  { %v132_v25 = vadd.f32 %v574_v20, %v120_v19 }
  0x9d   :  { %v136_v30 = vpack.c.bf16 %v132_v25, %v132_v25 }
  0x9e   :  { %v112_v9 = vpop.f32.mrf.mxu0 }
  0x9f   :  { %v113_v13 = vadd.f32 %v573_v10, %v112_v9  ;;  %v172_v35 = vunpack.c.l.b16 %v136_v30 }
  0xa1   :  { %v121_v17 = vmax.f32 %v113_v13, 0.0 }
  0xa3   :  { %v133_v23 = vadd.f32 %v574_v20, %v121_v17 }
  0xa5   :  { %v137_v28 = vpack.c.bf16 %v133_v23, %v133_v23  ;;  %v28_v23 = vld [vmem:[%s756_s0] sm:$0xff]  }
  0xa6   :  { %v115_v11 = vpop.f32.mrf.mxu0 }
  0xa7   :  { %v116_v12 = vadd.f32 %v573_v10, %v115_v11  ;;  %v173_v34 = vunpack.c.l.b16 %v137_v28 }
  0xa9   :  { %v122_v15 = vmax.f32 %v116_v12, 0.0  ;;  %v683_v36 = vpack.c.b16 %v173_v34, %v172_v35  ;;  %v412_v34 = vunpack.c.h.bf16 %v28_v23 }
  0xab   :  { %v134_v21 = vadd.f32 %v575_v16, %v122_v15 }
  0xad   :  { %v138_v26 = vpack.c.bf16 %v134_v21, %v134_v21 }
  0xae   :  { %v117_v18 = vpop.f32.mrf.mxu0 }
  0xaf   :  { %v118_v22 = vadd.f32 %v573_v10, %v117_v18  ;;  %v174_v31 = vunpack.c.l.b16 %v138_v26 }
  0xb1   :  { %v123_v24 = vmax.f32 %v118_v22, 0.0  ;;  %v576_v22 = vld [vmem:[%s761_s5] ss:$0 sm:$0xff] }
  0xb3   :  { %v135_v27 = vadd.f32 %v575_v16, %v123_v24 }
  0xb5   :  { %v139_v29 = vpack.c.bf16 %v135_v27, %v135_v27  ;;  %v411_v27 = vunpack.c.l.bf16 %v28_v23 }
  0xb7   :  { %v175_v32 = vunpack.c.l.b16 %v139_v29 }
  0xb9   :  { %v680_v33 = vpack.c.b16 %v175_v32, %v174_v31 }
  0xbb   :  { %199 = vmatpush.bf16.msra.mxu1 %v680_v33 }
  0xbf   :  { %200 = vmatpush.bf16.msra.mxu1 %v683_v36 }
  0xc2   :  { %491 = vmatmul.msk.bf16.vlgmr.msra.gmra.mxu1 %vm180_vm1, %v553_v37 }
  0xd2   :  { %492 = vmatmul.msk.bf16.gmra.mxu1 %vm180_vm1, %v554_v38  ;;  %v30_v38 = vld [vmem:[%s756_s0 + $0x8] sm:$0xff]   ;;  %s429_s0 = sshll.u32 %s763_s7, 4  ;;  %s430_s0 = int_to_ptr.hbm [resolvable:$true] %s429_s0 }
  0xe2   :  { %493 = vmatmul.msk.bf16.gmra.mxu1 %vm180_vm1, %v555_v39 }
  0xf2   :  { %494 = vmatmul.msk.bf16.gmra.mxu1 %vm180_vm1, %v556_v40 }
 0x13f   :  { %v202_v42 = vpop.f32.mrf.mxu1 }
 0x140   :  { %v222_v47 = vpack.c.bf16 %v202_v42, %v202_v42  ;;  %v413_v42 = vunpack.c.l.bf16 %v30_v38 }
 0x142   :  { %v234_v50 = vunpack.c.l.b16 %v222_v47 }
 0x147   :  { %v204_v48 = vpop.f32.mrf.mxu1 }
 0x148   :  { %v223_v49 = vpack.c.bf16 %v204_v48, %v204_v48 }
 0x14a   :  { %v235_v51 = vunpack.c.l.b16 %v223_v49  ;;  %v414_v49 = vunpack.c.h.bf16 %v30_v38 }
 0x14c   :  { %v238_v52 = vpack.c.b16 %v235_v51, %v234_v50 }
 0x14e   :  { %240 = vrot.lane.b32.xlu0 %v238_v52, %s603_s18 }
 0x14f   :  { %v207_v56 = vpop.f32.mrf.mxu1 }
 0x150   :  { %v224_v59 = vpack.c.bf16 %v207_v56, %v207_v56 }
 0x152   :  { %v236_v63 = vunpack.c.l.b16 %v224_v59 }
 0x157   :  { %v209_v60 = vpop.f32.mrf.mxu1 }
 0x158   :  { %v225_v62 = vpack.c.bf16 %v209_v60, %v209_v60 }
 0x15a   :  { %v237_v0 = vunpack.c.l.b16 %v225_v62 }
 0x15c   :  { %v239_v1 = vpack.c.b16 %v237_v0, %v236_v63 }
 0x15e   :  { %242 = vrot.lane.b32.xlu0 %v239_v1, %s603_s18 }
 0x15f   :  { %v212_v3 = vpop.f32.mrf.mxu1 }
 0x160   :  { %v226_v4 = vpack.c.bf16 %v212_v3, %v212_v3 }
 0x162   :  { %v248_v6 = vunpack.c.l.b16 %v226_v4 }
 0x167   :  { %v214_v5 = vpop.f32.mrf.mxu1 }
 0x168   :  { %v227_v7 = vpack.c.bf16 %v214_v5, %v214_v5 }
 0x16a   :  { %v249_v8 = vunpack.c.l.b16 %v227_v7 }
 0x16c   :  { %v252_v9 = vpack.c.b16 %v249_v8, %v248_v6 }
 0x16e   :  { %543 = vmatmul.msk.bf16.vlgmr.msra.gmra.mxu3 %vm254_vm2, %v252_v9 }
 0x16f   :  { %v217_v10 = vpop.f32.mrf.mxu1 }
 0x170   :  { %v228_v11 = vpack.c.bf16 %v217_v10, %v217_v10 }
 0x172   :  { %v250_v13 = vunpack.c.l.b16 %v228_v11 }
 0x177   :  { %v219_v12 = vpop.f32.mrf.mxu1 }
 0x178   :  { %v229_v14 = vpack.c.bf16 %v219_v12, %v219_v12 }
 0x17a   :  { %v251_v15 = vunpack.c.l.b16 %v229_v14 }
 0x17c   :  { %v253_v16 = vpack.c.b16 %v251_v15, %v250_v13 }
 0x17e   :  { %544 = vmatmul.msk.bf16.gmra.mxu3 %vm254_vm2, %v253_v16 }
 0x1c0   :  { %v241_v17 = vpop.permute.xlu0 %240 }
 0x1c1   :  { %v257_v18 = vsel %vm254_vm2, %v683_v36, %v241_v17 }
 0x1c2   :  { %377 = vmatmul.bf16.vlgmr.msra.gmra.mxu2 %v257_v18 }
 0x1d0   :  { %v243_v19 = vpop.permute.xlu0 %242 }
 0x1d1   :  { %v261_v20 = vsel %vm254_vm2, %v680_v33, %v243_v19 }
 0x1d2   :  { %382 = vmatmul.bf16.gmra.mxu2 %v261_v20 }
 0x1f1   :  { %v397_v21 = vpop.f32.mrf.mxu3 }
 0x1f9   :  { %v399_v29 = vpop.f32.mrf.mxu3 }
 0x201   :  { %v402_v37 = vpop.f32.mrf.mxu3 }
 0x209   :  { %v404_v47 = vpop.f32.mrf.mxu3 }
 0x245   :  { %v378_v24 = vpop.f32.mrf.mxu2 }
 0x246   :  { %v379_v25 = vadd.f32 %v576_v22, %v378_v24 }
 0x248   :  { %v398_v26 = vadd.f32 %v397_v21, %v379_v25 }
 0x24a   :  { %v407_v28 = vmax.f32 %v398_v26, 0.0 }
 0x24c   :  { %v415_v30 = vadd.f32 %v411_v27, %v407_v28 }
 0x24d   :  { %v380_v31 = vpop.f32.mrf.mxu2 }
 0x24e   :  { %419 = vst.msk [vmem:[#allocation2] sm:$0xff] %vm180_vm1, %v415_v30  ;;  %v381_v32 = vadd.f32 %v576_v22, %v380_v31 }
 0x250   :  { %v400_v33 = vadd.f32 %v399_v29, %v381_v32 }
 0x252   :  { %v408_v35 = vmax.f32 %v400_v33, 0.0 }
 0x254   :  { %v416_v36 = vadd.f32 %v412_v34, %v408_v35 }
 0x255   :  { %v383_v39 = vpop.f32.mrf.mxu2 }
 0x256   :  { %420 = vst.msk [vmem:[#allocation2 + $0x8] sm:$0xff] %vm180_vm1, %v416_v36  ;;  %v384_v40 = vadd.f32 %v576_v22, %v383_v39 }
 0x258   :  { %v403_v41 = vadd.f32 %v402_v37, %v384_v40 }
 0x25a   :  { %v409_v43 = vmax.f32 %v403_v41, 0.0 }
 0x25c   :  { %v417_v44 = vadd.f32 %v413_v42, %v409_v43 }
 0x25d   :  { %v385_v45 = vpop.f32.mrf.mxu2 }
 0x25e   :  { %421 = vst.msk [vmem:[#allocation2 + $0x10] sm:$0xff] %vm180_vm1, %v417_v44  ;;  %v386_v46 = vadd.f32 %v576_v22, %v385_v45 }
 0x260   :  { %v405_v48 = vadd.f32 %v404_v47, %v386_v46 }
 0x262   :  { %v410_v50 = vmax.f32 %v405_v48, 0.0 }
 0x264   :  { %v418_v51 = vadd.f32 %v414_v49, %v410_v50 }
 0x266   :  { %422 = vst.msk [vmem:[#allocation2 + $0x18] sm:$0xff] %vm180_vm1, %v418_v51 }
 0x267   :  { %435 = dma.vmem_to_hbm [thread:$0]  %s428_s8, 512, %s430_s0, [#allocation3], %s605_s11, %s605_s11, %s606_s1  }
 0x268   :  { %601 = dma.done.wait [#allocation3], 512  }
 0x269   :  { %602 = vsyncadd [#allocation3], 4294966784 }
 0x26a   :  { %440 = vsyncpa [#allocation3], 1 }

</bundles_post_ra>
